<compile_context>
chip_gen: v6e
topology: v6e:2x2x1
jax: 0.10.0
libtpu: 0.0.40
codegen_flags: <defaults>
</compile_context>

<pallas_src>
import jax
import jax.numpy as jnp
from jax.experimental import pallas as pl
from jax.experimental.pallas import tpu as pltpu

IN_FEATURES = 2
HIDDEN = 8
LANE = 128
MAX_TB = 256 * 1024  # lane-tile cap: double-buffered (2,TB)+(1,TB) f32 stays << 32 MiB scoped VMEM


def _sigmoid(z):
    # 1 / (1 + exp(-z)): exp and approx reciprocal both run on the EUP slot.
    return pl.reciprocal(1.0 + jnp.exp(-z), approx=True)


def mlp_kernel(x_ref, w1_ref, b1_ref, w2_ref, b2_ref, o_ref):
    # x_ref: (2, TB) feature-major, batch on the lane axis.
    x = x_ref[...]
    x0 = x[0:1, :]                      # (1, TB)
    x1 = x[1:2, :]                      # (1, TB)
    y = jnp.zeros_like(x0)
    # Tiny contractions (K=2 then K=8): statically unrolled VPU FMAs, no MXU.
    for j in range(HIDDEN):
        zj = w1_ref[j, 0] * x0 + w1_ref[j, 1] * x1 + b1_ref[j]
        y = y + w2_ref[j] * _sigmoid(zj)
    o_ref[...] = _sigmoid(y + b2_ref[0])


def binary_classification_net(x, w1, b1, w2, b2):
    """x: (B, 2) f32; w1: (8, 2); b1: (8,); w2: (1, 8); b2: (1,) — PyTorch layouts."""
    B = x.shape[0]
    # Batch tile: multiple of 128 lanes, capped so per-step VMEM stays small on all gens.
    tb = min(MAX_TB, ((B + LANE - 1) // LANE) * LANE)
    bp = ((B + tb - 1) // tb) * tb
    grid = (bp // tb,)

    # Feature-major / lane-dense layout with zero-padded batch tail.
    xt = jnp.zeros((IN_FEATURES, bp), dtype=jnp.float32).at[:, :B].set(x.T)
    w2_flat = w2.reshape(HIDDEN).astype(jnp.float32)

    smem = pl.BlockSpec(memory_space=pltpu.MemorySpace.SMEM)
    out = pl.pallas_call(
        mlp_kernel,
        out_shape=jax.ShapeDtypeStruct((1, bp), jnp.float32),
        grid=grid,
        in_specs=[
            pl.BlockSpec((IN_FEATURES, tb), lambda i: (0, i)),  # stream x tiles
            smem,  # w1 (8, 2) resident scalars
            smem,  # b1 (8,)
            smem,  # w2 (8,)
            smem,  # b2 (1,)
        ],
        out_specs=pl.BlockSpec((1, tb), lambda i: (0, i)),
        compiler_params=pltpu.CompilerParams(
            dimension_semantics=("parallel",)),
    )(xt,
      w1.astype(jnp.float32),
      b1.astype(jnp.float32),
      w2_flat,
      b2.astype(jnp.float32))

    return out[0, :B].reshape(B, 1)


def reference(x, w1, b1, w2, b2):
    h = jax.nn.sigmoid(x @ w1.T + b1)
    return jax.nn.sigmoid(h @ w2.T + b2)


if __name__ == "__main__":
    key = jax.random.PRNGKey(0)
    kx, k1, k2, k3, k4 = jax.random.split(key, 5)

    B = 200  # non-multiple of 128 to exercise the padded tail path
    x = jax.random.normal(kx, (B, 2), dtype=jnp.float32)

    # Deterministic parameter init (shapes match nn.Linear(2,8) and nn.Linear(8,1)).
    w1 = jax.random.normal(k1, (8, 2), dtype=jnp.float32) * 0.5
    b1 = jax.random.normal(k2, (8,), dtype=jnp.float32) * 0.1
    w2 = jax.random.normal(k3, (1, 8), dtype=jnp.float32) * 0.5
    b2 = jax.random.normal(k4, (1,), dtype=jnp.float32) * 0.1

    out = binary_classification_net(x, w1, b1, w2, b2)
    jax.block_until_ready(out)

    ref = reference(x, w1, b1, w2, b2)
    assert out.shape == (B, 1)
    # Tolerance accounts for pl.reciprocal(approx=True) in the sigmoid denominators.
    assert jnp.allclose(out, ref, atol=2e-3, rtol=2e-3)

    print("KERNEL_OK")
</pallas_src>

<mosaic_0001>
module attributes {stable_mosaic.version = 11 : i64} {
  func.func @mlp_kernel(%arg0: i32, %arg1: memref<2x256xf32, #tpu.memory_space<vmem>>, %arg2: memref<8x2xf32, #tpu.memory_space<smem>>, %arg3: memref<8xf32, #tpu.memory_space<smem>>, %arg4: memref<8xf32, #tpu.memory_space<smem>>, %arg5: memref<1xf32, #tpu.memory_space<smem>>, %arg6: memref<1x256xf32, #tpu.memory_space<vmem>>) attributes {dimension_semantics = [#tpu.dimension_semantics<parallel>], iteration_bounds = array<i64: 1>, scalar_prefetch = 0 : i64, scratch_operands = 0 : i64, tpu.core_type = #tpu.core_type<tc>, window_params = [{transform_indices = @transform_0, window_bounds = array<i64: 2, 256>}, {transform_indices = @transform_1, window_bounds = array<i64: 8, 2>}, {transform_indices = @transform_2, window_bounds = array<i64: 8>}, {transform_indices = @transform_3, window_bounds = array<i64: 8>}, {transform_indices = @transform_4, window_bounds = array<i64: 1>}, {transform_indices = @transform_5, window_bounds = array<i64: 1, 256>}]} {
    %c0 = arith.constant 0 : index
    %c0_0 = arith.constant 0 : index
    %0 = vector.load %arg1[%c0, %c0_0] : memref<2x256xf32, #tpu.memory_space<vmem>>, vector<2x256xf32>
    %1 = vector.extract_strided_slice %0 {offsets = [0, 0], sizes = [1, 256], strides = [1, 1]} : vector<2x256xf32> to vector<1x256xf32>
    %2 = vector.extract_strided_slice %0 {offsets = [1, 0], sizes = [1, 256], strides = [1, 1]} : vector<2x256xf32> to vector<1x256xf32>
    %cst = arith.constant 0.000000e+00 : f32
    %3 = vector.broadcast %cst : f32 to vector<1x256xf32>
    %c0_1 = arith.constant 0 : index
    %c0_2 = arith.constant 0 : index
    %4 = memref.load %arg2[%c0_1, %c0_2] : memref<8x2xf32, #tpu.memory_space<smem>>
    %5 = vector.broadcast %4 : f32 to vector<1x256xf32>
    %6 = arith.mulf %5, %1 : vector<1x256xf32>
    %c0_3 = arith.constant 0 : index
    %c1 = arith.constant 1 : index
    %7 = memref.load %arg2[%c0_3, %c1] : memref<8x2xf32, #tpu.memory_space<smem>>
    %8 = vector.broadcast %7 : f32 to vector<1x256xf32>
    %9 = arith.mulf %8, %2 : vector<1x256xf32>
    %10 = arith.addf %6, %9 : vector<1x256xf32>
    %c0_4 = arith.constant 0 : index
    %11 = memref.load %arg3[%c0_4] : memref<8xf32, #tpu.memory_space<smem>>
    %12 = vector.broadcast %11 : f32 to vector<1x256xf32>
    %13 = arith.addf %10, %12 : vector<1x256xf32>
    %c0_5 = arith.constant 0 : index
    %14 = memref.load %arg4[%c0_5] : memref<8xf32, #tpu.memory_space<smem>>
    %cst_6 = arith.constant 0.000000e+00 : f32
    %15 = vector.broadcast %cst_6 : f32 to vector<1x256xf32>
    %16 = arith.subf %15, %13 : vector<1x256xf32>
    %17 = math.exp %16 : vector<1x256xf32>
    %cst_7 = arith.constant 1.000000e+00 : f32
    %18 = vector.broadcast %cst_7 : f32 to vector<1x256xf32>
    %19 = arith.addf %18, %17 : vector<1x256xf32>
    %20 = tpu.reciprocal %19 {approx = true} : vector<1x256xf32> -> vector<1x256xf32>
    %21 = vector.broadcast %14 : f32 to vector<1x256xf32>
    %22 = arith.mulf %21, %20 : vector<1x256xf32>
    %23 = arith.addf %3, %22 : vector<1x256xf32>
    %c1_8 = arith.constant 1 : index
    %c0_9 = arith.constant 0 : index
    %24 = memref.load %arg2[%c1_8, %c0_9] : memref<8x2xf32, #tpu.memory_space<smem>>
    %25 = vector.broadcast %24 : f32 to vector<1x256xf32>
    %26 = arith.mulf %25, %1 : vector<1x256xf32>
    %c1_10 = arith.constant 1 : index
    %c1_11 = arith.constant 1 : index
    %27 = memref.load %arg2[%c1_10, %c1_11] : memref<8x2xf32, #tpu.memory_space<smem>>
    %28 = vector.broadcast %27 : f32 to vector<1x256xf32>
    %29 = arith.mulf %28, %2 : vector<1x256xf32>
    %30 = arith.addf %26, %29 : vector<1x256xf32>
    %c1_12 = arith.constant 1 : index
    %31 = memref.load %arg3[%c1_12] : memref<8xf32, #tpu.memory_space<smem>>
    %32 = vector.broadcast %31 : f32 to vector<1x256xf32>
    %33 = arith.addf %30, %32 : vector<1x256xf32>
    %c1_13 = arith.constant 1 : index
    %34 = memref.load %arg4[%c1_13] : memref<8xf32, #tpu.memory_space<smem>>
    %cst_14 = arith.constant 0.000000e+00 : f32
    %35 = vector.broadcast %cst_14 : f32 to vector<1x256xf32>
    %36 = arith.subf %35, %33 : vector<1x256xf32>
    %37 = math.exp %36 : vector<1x256xf32>
    %cst_15 = arith.constant 1.000000e+00 : f32
    %38 = vector.broadcast %cst_15 : f32 to vector<1x256xf32>
    %39 = arith.addf %38, %37 : vector<1x256xf32>
    %40 = tpu.reciprocal %39 {approx = true} : vector<1x256xf32> -> vector<1x256xf32>
    %41 = vector.broadcast %34 : f32 to vector<1x256xf32>
    %42 = arith.mulf %41, %40 : vector<1x256xf32>
    %43 = arith.addf %23, %42 : vector<1x256xf32>
    %c2 = arith.constant 2 : index
    %c0_16 = arith.constant 0 : index
    %44 = memref.load %arg2[%c2, %c0_16] : memref<8x2xf32, #tpu.memory_space<smem>>
    %45 = vector.broadcast %44 : f32 to vector<1x256xf32>
    %46 = arith.mulf %45, %1 : vector<1x256xf32>
    %c2_17 = arith.constant 2 : index
    %c1_18 = arith.constant 1 : index
    %47 = memref.load %arg2[%c2_17, %c1_18] : memref<8x2xf32, #tpu.memory_space<smem>>
    %48 = vector.broadcast %47 : f32 to vector<1x256xf32>
    %49 = arith.mulf %48, %2 : vector<1x256xf32>
    %50 = arith.addf %46, %49 : vector<1x256xf32>
    %c2_19 = arith.constant 2 : index
    %51 = memref.load %arg3[%c2_19] : memref<8xf32, #tpu.memory_space<smem>>
    %52 = vector.broadcast %51 : f32 to vector<1x256xf32>
    %53 = arith.addf %50, %52 : vector<1x256xf32>
    %c2_20 = arith.constant 2 : index
    %54 = memref.load %arg4[%c2_20] : memref<8xf32, #tpu.memory_space<smem>>
    %cst_21 = arith.constant 0.000000e+00 : f32
    %55 = vector.broadcast %cst_21 : f32 to vector<1x256xf32>
    %56 = arith.subf %55, %53 : vector<1x256xf32>
    %57 = math.exp %56 : vector<1x256xf32>
    %cst_22 = arith.constant 1.000000e+00 : f32
    %58 = vector.broadcast %cst_22 : f32 to vector<1x256xf32>
    %59 = arith.addf %58, %57 : vector<1x256xf32>
    %60 = tpu.reciprocal %59 {approx = true} : vector<1x256xf32> -> vector<1x256xf32>
    %61 = vector.broadcast %54 : f32 to vector<1x256xf32>
    %62 = arith.mulf %61, %60 : vector<1x256xf32>
    %63 = arith.addf %43, %62 : vector<1x256xf32>
    %c3 = arith.constant 3 : index
    %c0_23 = arith.constant 0 : index
    %64 = memref.load %arg2[%c3, %c0_23] : memref<8x2xf32, #tpu.memory_space<smem>>
    %65 = vector.broadcast %64 : f32 to vector<1x256xf32>
    %66 = arith.mulf %65, %1 : vector<1x256xf32>
    %c3_24 = arith.constant 3 : index
    %c1_25 = arith.constant 1 : index
    %67 = memref.load %arg2[%c3_24, %c1_25] : memref<8x2xf32, #tpu.memory_space<smem>>
    %68 = vector.broadcast %67 : f32 to vector<1x256xf32>
    %69 = arith.mulf %68, %2 : vector<1x256xf32>
    %70 = arith.addf %66, %69 : vector<1x256xf32>
    %c3_26 = arith.constant 3 : index
    %71 = memref.load %arg3[%c3_26] : memref<8xf32, #tpu.memory_space<smem>>
    %72 = vector.broadcast %71 : f32 to vector<1x256xf32>
    %73 = arith.addf %70, %72 : vector<1x256xf32>
    %c3_27 = arith.constant 3 : index
    %74 = memref.load %arg4[%c3_27] : memref<8xf32, #tpu.memory_space<smem>>
    %cst_28 = arith.constant 0.000000e+00 : f32
    %75 = vector.broadcast %cst_28 : f32 to vector<1x256xf32>
    %76 = arith.subf %75, %73 : vector<1x256xf32>
    %77 = math.exp %76 : vector<1x256xf32>
    %cst_29 = arith.constant 1.000000e+00 : f32
    %78 = vector.broadcast %cst_29 : f32 to vector<1x256xf32>
    %79 = arith.addf %78, %77 : vector<1x256xf32>
    %80 = tpu.reciprocal %79 {approx = true} : vector<1x256xf32> -> vector<1x256xf32>
    %81 = vector.broadcast %74 : f32 to vector<1x256xf32>
    %82 = arith.mulf %81, %80 : vector<1x256xf32>
    %83 = arith.addf %63, %82 : vector<1x256xf32>
    %c4 = arith.constant 4 : index
    %c0_30 = arith.constant 0 : index
    %84 = memref.load %arg2[%c4, %c0_30] : memref<8x2xf32, #tpu.memory_space<smem>>
    %85 = vector.broadcast %84 : f32 to vector<1x256xf32>
    %86 = arith.mulf %85, %1 : vector<1x256xf32>
    %c4_31 = arith.constant 4 : index
    %c1_32 = arith.constant 1 : index
    %87 = memref.load %arg2[%c4_31, %c1_32] : memref<8x2xf32, #tpu.memory_space<smem>>
    %88 = vector.broadcast %87 : f32 to vector<1x256xf32>
    %89 = arith.mulf %88, %2 : vector<1x256xf32>
    %90 = arith.addf %86, %89 : vector<1x256xf32>
    %c4_33 = arith.constant 4 : index
    %91 = memref.load %arg3[%c4_33] : memref<8xf32, #tpu.memory_space<smem>>
    %92 = vector.broadcast %91 : f32 to vector<1x256xf32>
    %93 = arith.addf %90, %92 : vector<1x256xf32>
    %c4_34 = arith.constant 4 : index
    %94 = memref.load %arg4[%c4_34] : memref<8xf32, #tpu.memory_space<smem>>
    %cst_35 = arith.constant 0.000000e+00 : f32
    %95 = vector.broadcast %cst_35 : f32 to vector<1x256xf32>
    %96 = arith.subf %95, %93 : vector<1x256xf32>
    %97 = math.exp %96 : vector<1x256xf32>
    %cst_36 = arith.constant 1.000000e+00 : f32
    %98 = vector.broadcast %cst_36 : f32 to vector<1x256xf32>
    %99 = arith.addf %98, %97 : vector<1x256xf32>
    %100 = tpu.reciprocal %99 {approx = true} : vector<1x256xf32> -> vector<1x256xf32>
    %101 = vector.broadcast %94 : f32 to vector<1x256xf32>
    %102 = arith.mulf %101, %100 : vector<1x256xf32>
    %103 = arith.addf %83, %102 : vector<1x256xf32>
    %c5 = arith.constant 5 : index
    %c0_37 = arith.constant 0 : index
    %104 = memref.load %arg2[%c5, %c0_37] : memref<8x2xf32, #tpu.memory_space<smem>>
    %105 = vector.broadcast %104 : f32 to vector<1x256xf32>
    %106 = arith.mulf %105, %1 : vector<1x256xf32>
    %c5_38 = arith.constant 5 : index
    %c1_39 = arith.constant 1 : index
    %107 = memref.load %arg2[%c5_38, %c1_39] : memref<8x2xf32, #tpu.memory_space<smem>>
    %108 = vector.broadcast %107 : f32 to vector<1x256xf32>
    %109 = arith.mulf %108, %2 : vector<1x256xf32>
    %110 = arith.addf %106, %109 : vector<1x256xf32>
    %c5_40 = arith.constant 5 : index
    %111 = memref.load %arg3[%c5_40] : memref<8xf32, #tpu.memory_space<smem>>
    %112 = vector.broadcast %111 : f32 to vector<1x256xf32>
    %113 = arith.addf %110, %112 : vector<1x256xf32>
    %c5_41 = arith.constant 5 : index
    %114 = memref.load %arg4[%c5_41] : memref<8xf32, #tpu.memory_space<smem>>
    %cst_42 = arith.constant 0.000000e+00 : f32
    %115 = vector.broadcast %cst_42 : f32 to vector<1x256xf32>
    %116 = arith.subf %115, %113 : vector<1x256xf32>
    %117 = math.exp %116 : vector<1x256xf32>
    %cst_43 = arith.constant 1.000000e+00 : f32
    %118 = vector.broadcast %cst_43 : f32 to vector<1x256xf32>
    %119 = arith.addf %118, %117 : vector<1x256xf32>
    %120 = tpu.reciprocal %119 {approx = true} : vector<1x256xf32> -> vector<1x256xf32>
    %121 = vector.broadcast %114 : f32 to vector<1x256xf32>
    %122 = arith.mulf %121, %120 : vector<1x256xf32>
    %123 = arith.addf %103, %122 : vector<1x256xf32>
    %c6 = arith.constant 6 : index
    %c0_44 = arith.constant 0 : index
    %124 = memref.load %arg2[%c6, %c0_44] : memref<8x2xf32, #tpu.memory_space<smem>>
    %125 = vector.broadcast %124 : f32 to vector<1x256xf32>
    %126 = arith.mulf %125, %1 : vector<1x256xf32>
    %c6_45 = arith.constant 6 : index
    %c1_46 = arith.constant 1 : index
    %127 = memref.load %arg2[%c6_45, %c1_46] : memref<8x2xf32, #tpu.memory_space<smem>>
    %128 = vector.broadcast %127 : f32 to vector<1x256xf32>
    %129 = arith.mulf %128, %2 : vector<1x256xf32>
    %130 = arith.addf %126, %129 : vector<1x256xf32>
    %c6_47 = arith.constant 6 : index
    %131 = memref.load %arg3[%c6_47] : memref<8xf32, #tpu.memory_space<smem>>
    %132 = vector.broadcast %131 : f32 to vector<1x256xf32>
    %133 = arith.addf %130, %132 : vector<1x256xf32>
    %c6_48 = arith.constant 6 : index
    %134 = memref.load %arg4[%c6_48] : memref<8xf32, #tpu.memory_space<smem>>
    %cst_49 = arith.constant 0.000000e+00 : f32
    %135 = vector.broadcast %cst_49 : f32 to vector<1x256xf32>
    %136 = arith.subf %135, %133 : vector<1x256xf32>
    %137 = math.exp %136 : vector<1x256xf32>
    %cst_50 = arith.constant 1.000000e+00 : f32
    %138 = vector.broadcast %cst_50 : f32 to vector<1x256xf32>
    %139 = arith.addf %138, %137 : vector<1x256xf32>
    %140 = tpu.reciprocal %139 {approx = true} : vector<1x256xf32> -> vector<1x256xf32>
    %141 = vector.broadcast %134 : f32 to vector<1x256xf32>
    %142 = arith.mulf %141, %140 : vector<1x256xf32>
    %143 = arith.addf %123, %142 : vector<1x256xf32>
    %c7 = arith.constant 7 : index
    %c0_51 = arith.constant 0 : index
    %144 = memref.load %arg2[%c7, %c0_51] : memref<8x2xf32, #tpu.memory_space<smem>>
    %145 = vector.broadcast %144 : f32 to vector<1x256xf32>
    %146 = arith.mulf %145, %1 : vector<1x256xf32>
    %c7_52 = arith.constant 7 : index
    %c1_53 = arith.constant 1 : index
    %147 = memref.load %arg2[%c7_52, %c1_53] : memref<8x2xf32, #tpu.memory_space<smem>>
    %148 = vector.broadcast %147 : f32 to vector<1x256xf32>
    %149 = arith.mulf %148, %2 : vector<1x256xf32>
    %150 = arith.addf %146, %149 : vector<1x256xf32>
    %c7_54 = arith.constant 7 : index
    %151 = memref.load %arg3[%c7_54] : memref<8xf32, #tpu.memory_space<smem>>
    %152 = vector.broadcast %151 : f32 to vector<1x256xf32>
    %153 = arith.addf %150, %152 : vector<1x256xf32>
    %c7_55 = arith.constant 7 : index
    %154 = memref.load %arg4[%c7_55] : memref<8xf32, #tpu.memory_space<smem>>
    %cst_56 = arith.constant 0.000000e+00 : f32
    %155 = vector.broadcast %cst_56 : f32 to vector<1x256xf32>
    %156 = arith.subf %155, %153 : vector<1x256xf32>
    %157 = math.exp %156 : vector<1x256xf32>
    %cst_57 = arith.constant 1.000000e+00 : f32
    %158 = vector.broadcast %cst_57 : f32 to vector<1x256xf32>
    %159 = arith.addf %158, %157 : vector<1x256xf32>
    %160 = tpu.reciprocal %159 {approx = true} : vector<1x256xf32> -> vector<1x256xf32>
    %161 = vector.broadcast %154 : f32 to vector<1x256xf32>
    %162 = arith.mulf %161, %160 : vector<1x256xf32>
    %163 = arith.addf %143, %162 : vector<1x256xf32>
    %c0_58 = arith.constant 0 : index
    %164 = memref.load %arg5[%c0_58] : memref<1xf32, #tpu.memory_space<smem>>
    %165 = vector.broadcast %164 : f32 to vector<1x256xf32>
    %166 = arith.addf %163, %165 : vector<1x256xf32>
    %cst_59 = arith.constant 0.000000e+00 : f32
    %167 = vector.broadcast %cst_59 : f32 to vector<1x256xf32>
    %168 = arith.subf %167, %166 : vector<1x256xf32>
    %169 = math.exp %168 : vector<1x256xf32>
    %cst_60 = arith.constant 1.000000e+00 : f32
    %170 = vector.broadcast %cst_60 : f32 to vector<1x256xf32>
    %171 = arith.addf %170, %169 : vector<1x256xf32>
    %172 = tpu.reciprocal %171 {approx = true} : vector<1x256xf32> -> vector<1x256xf32>
    %c0_61 = arith.constant 0 : index
    %c0_62 = arith.constant 0 : index
    %173 = vector.load %arg6[%c0_61, %c0_62] : memref<1x256xf32, #tpu.memory_space<vmem>>, vector<1x256xf32>
    tpu.vector_store %arg6[%c0_61, %c0_62], %172 {strides = array<i32>} : memref<1x256xf32, #tpu.memory_space<vmem>>, vector<1x256xf32>,
    return
  }
  func.func @transform_0(%arg0: i32) -> (i32, i32) {
    %c0_i32 = arith.constant 0 : i32
    %c0_i32_0 = arith.constant 0 : i32
    return %c0_i32, %arg0 : i32, i32
  }
  func.func @transform_1(%arg0: i32) -> (i32, i32) {
    %c0_i32 = arith.constant 0 : i32
    %c0_i32_0 = arith.constant 0 : i32
    %c0_i32_1 = arith.constant 0 : i32
    return %c0_i32, %c0_i32_0 : i32, i32
  }
  func.func @transform_2(%arg0: i32) -> i32 {
    %c0_i32 = arith.constant 0 : i32
    %c0_i32_0 = arith.constant 0 : i32
    return %c0_i32 : i32
  }
  func.func @transform_3(%arg0: i32) -> i32 {
    %c0_i32 = arith.constant 0 : i32
    %c0_i32_0 = arith.constant 0 : i32
    return %c0_i32 : i32
  }
  func.func @transform_4(%arg0: i32) -> i32 {
    %c0_i32 = arith.constant 0 : i32
    %c0_i32_0 = arith.constant 0 : i32
    return %c0_i32 : i32
  }
  func.func @transform_5(%arg0: i32) -> (i32, i32) {
    %c0_i32 = arith.constant 0 : i32
    %c0_i32_0 = arith.constant 0 : i32
    return %c0_i32, %arg0 : i32, i32
  }
}

</mosaic_0001>

<bundles_post_ra>
// kernel: tpu_custom_call.1
= control target key start
LH: loop header
LB: loop body
LE: loop exit
PB: predicated region body
PF: predicated region fallthrough
CT: control target
= control target key end

     0   :  { %11 = vsyncpa [#allocation5], 0  ;;  %s507_s0 = inlined_call_operand.vmem [shape: f32[2,256], index: 0, kind: input, shape index: {}]   ;;  %s508_s1 = inlined_call_operand.vmem [shape: f32[8,2], index: 1, kind: input, shape index: {}]   ;;  %s509_s2 = inlined_call_operand.vmem [shape: f32[8], index: 2, kind: input, shape index: {}]   ;;  %s510_s3 = inlined_call_operand.vmem [shape: f32[8], index: 3, kind: input, shape index: {}]   ;;  %s511_s4 = inlined_call_operand.<no memory space> [shape: f32[1], index: 4, kind: input, shape index: {}]   ;;  %s512_s5 = inlined_call_operand.hbm [shape: f32[1,256], index: 5, kind: output, shape index: {}]  }
   0x1   :  { %12 = vsyncpa [#allocation7], 0  ;;  %s32_s20 = sshll.u32 %s509_s2, 4  ;;  %s33_s20 = int_to_ptr.vmem [resolvable:$true] %s32_s20 }
   0x2   :  { %13 = vsyncpa [#allocation4], 0  ;;  %s22_s23 = sshll.u32 %s508_s1, 4  ;;  %s359_s24 = scalar_lea.vmem %s33_s20, 16  ;;  %s23_s23 = int_to_ptr.vmem [resolvable:$true] %s22_s23 }
   0x3   :  { %p360_p0 = scmp.ne.s32.totalorder %s33_s20, %s359_s24  ;;  %p364_p1 = scmp.lt.s32.totalorder %s33_s20, %s33_s20 }
   0x4   :  { %p365_p2 = scmp.lt.s32.totalorder %s359_s24, %s359_s24 }
   0x6   :  { %p366_p3 = por %p365_p2, %p364_p1 }
   0x8   :  { %p367_p4 = pnand %p366_p3, %p360_p0 }
   0xa   :  { %370 = shalt.err (!%p367_p4)
}
   0xb   :  { %s421_s25 = smov [#allocation6]   ;;  %s371_s26 = scalar_lea.vmem %s23_s23, 128 }
   0xc   :  { %35 = dma.vmem_to_smem %s33_s20, 16, %s421_s25, [#allocation7]  }
   0xd   :  { %p372_p5 = scmp.ne.s32.totalorder %s23_s23, %s371_s26  ;;  %p376_p6 = scmp.lt.s32.totalorder %s23_s23, %s23_s23 }
   0xe   :  { %p377_p7 = scmp.lt.s32.totalorder %s371_s26, %s371_s26 }
  0x10   :  { %p378_p8 = por %p377_p7, %p376_p6 }
  0x12   :  { %p379_p9 = pnand %p378_p8, %p372_p5 }
  0x14   :  { %382 = shalt.err (!%p379_p9)
}
  0x15   :  { %s422_s2 = smov [#allocation3]   ;;  %s42_s28 = sshll.u32 %s510_s3, 4  ;;  %s43_s28 = int_to_ptr.vmem [resolvable:$true] %s42_s28 }
  0x16   :  { %25 = dma.vmem_to_smem %s23_s23, 128, %s422_s2, [#allocation5]  }
  0x17   :  { %s383_s29 = scalar_lea.vmem %s43_s28, 16  ;;  %p388_p11 = scmp.lt.s32.totalorder %s43_s28, %s43_s28 }
  0x18   :  { %p384_p10 = scmp.ne.s32.totalorder %s43_s28, %s383_s29  ;;  %p389_p12 = scmp.lt.s32.totalorder %s383_s29, %s383_s29 }
  0x1a   :  { %p390_p13 = por %p389_p12, %p388_p11 }
  0x1c   :  { %p391_p0 = pnand %p390_p13, %p384_p10 }
  0x1e   :  { %394 = shalt.err (!%p391_p0)
}
  0x1f   :  { %s423_s30 = smov [#allocation8]  }
  0x20   :  { %45 = dma.vmem_to_smem %s43_s28, 16, %s423_s30, [#allocation7]  }
  0x21   :  { %415 = dma.done.wait [#allocation5], 128  }
  0x22   :  { %416 = vsyncadd [#allocation5], 4294967168 }
  0x23   :  { %417 = dma.done.wait [#allocation7], 32  }
  0x24   :  { %418 = vsyncadd [#allocation7], 4294967264 }
  0x25   :  { %57 = sfence }
  0x26   :  { %s59_s6 = sld [smem:[#allocation3]]  ;;  %v468_v0 = vld [vmem:[%s507_s0] sm:$0xf] }
  0x27   :  { %s281_s7 = sld [smem:[#allocation3 + $0x1]] }
  0x28   :  { %s70_s8 = sld [smem:[#allocation6]] }
  0x29   :  { %s283_s9 = sld [smem:[#allocation3 + $0x80]] }
  0x2a   :  { %s284_s11 = sld [smem:[#allocation3 + $0x81]] }
  0x2b   :  { %s286_s12 = sld [smem:[#allocation6 + $0x1]] }
  0x2c   :  { %v60_v1 = vstv %s59_s6  ;;  %s288_s13 = sld [smem:[#allocation3 + $0x100]] }
  0x2d   :  { %v63_v2 = vstv %s281_s7  ;;  %v61_v3 = vmul.f32 %v60_v1, %v468_v0  ;;  %s289_s14 = sld [smem:[#allocation3 + $0x101]] }
  0x2e   :  { %v64_v4 = vmul.f32 %v63_v2, %v468_v0  ;;  %v71_v7 = vstv %s70_s8  ;;  %s472_s15 = sld [smem:[#allocation6 + $0x2]] }
  0x2f   :  { %v83_v6 = vstv %s283_s9  ;;  %s293_s0 = sld [smem:[#allocation3 + $0x180]] }
  0x30   :  { %v282_v5 = vrot.slane %v64_v4, 9  ;;  %v86_v8 = vstv %s284_s11  ;;  %v84_v10 = vmul.f32 %v83_v6, %v468_v0  ;;  %s294_s16 = sld [smem:[#allocation3 + $0x181]] }
  0x31   :  { %v87_v11 = vmul.f32 %v86_v8, %v468_v0  ;;  %v94_v15 = vstv %s286_s12  ;;  %s476_s17 = sld [smem:[#allocation6 + $0x3]]  ;;  %s425_s12 = smov [#allocation9]  }
  0x32   :  { %v69_v9 = vadd.f32 %v282_v5, %v61_v3  ;;  %v106_v14 = vstv %s288_s13  ;;  %s298_s18 = sld [smem:[#allocation3 + $0x200]]  ;;  %s271_s13 = sshll.u32 %s425_s12, 4  ;;  %s272_s13 = int_to_ptr.vmem [resolvable:$true] %s271_s13 }
  0x33   :  { %v285_v13 = vrot.slane %v87_v11, 9  ;;  %v109_v16 = vstv %s289_s14  ;;  %v107_v19 = vmul.f32 %v106_v14, %v468_v0  ;;  %s299_s19 = sld [smem:[#allocation3 + $0x201]]  ;;  %p400_p2 = scmp.lt.s32.totalorder %s272_s13, %s272_s13 }
  0x34   :  { %v72_v12 = vadd.f32 %v71_v7, %v69_v9  ;;  %v110_v20 = vmul.f32 %v109_v16, %v468_v0  ;;  %v117_v25 = vstv %s472_s15  ;;  %s482_s20 = sld [smem:[#allocation6 + $0x4]] }
  0x35   :  { %v92_v18 = vadd.f32 %v285_v13, %v84_v10  ;;  %v129_v24 = vstv %s293_s0  ;;  %s303_s21 = sld [smem:[#allocation3 + $0x280]] }
  0x36   :  { %v74_v17 = vsub.f32 0.0, %v72_v12  ;;  %v290_v23 = vrot.slane %v110_v20, 9  ;;  %v130_v26 = vmul.f32 %v129_v24, %v468_v0  ;;  %v132_v27 = vstv %s294_s16  ;;  %s304_s22 = sld [smem:[#allocation3 + $0x281]] }
  0x37   :  { %v95_v22 = vadd.f32 %v94_v15, %v92_v18  ;;  %v133_v30 = vmul.f32 %v132_v27, %v468_v0  ;;  %v140_v35 = vstv %s476_s17  ;;  %s487_s23 = sld [smem:[#allocation6 + $0x5]] }
  0x38   :  { %v75_v21 = vmul.f32 1.442695, %v74_v17  ;;  %v115_v29 = vadd.f32 %v290_v23, %v107_v19  ;;  %v152_v34 = vstv %s298_s18  ;;  %s308_s24 = sld [smem:[#allocation3 + $0x300]] }
  0x39   :  { %v97_v28 = vsub.f32 0.0, %v95_v22  ;;  %v295_v33 = vrot.slane %v133_v30, 9  ;;  %v153_v36 = vmul.f32 %v152_v34, %v468_v0  ;;  %v155_v37 = vstv %s299_s19  ;;  %s309_s25 = sld [smem:[#allocation3 + $0x301]] }
  0x3a   :  { %323 = vpow2.f32 %v75_v21  ;;  %v118_v32 = vadd.f32 %v117_v25, %v115_v29  ;;  %v156_v40 = vmul.f32 %v155_v37, %v468_v0  ;;  %v163_v45 = vstv %s482_s20  ;;  %s492_s26 = sld [smem:[#allocation6 + $0x6]] }
  0x3b   :  { %v98_v31 = vmul.f32 1.442695, %v97_v28  ;;  %v138_v39 = vadd.f32 %v295_v33, %v130_v26  ;;  %v175_v44 = vstv %s303_s21  ;;  %s313_s2 = sld [smem:[#allocation3 + $0x380]] }
  0x3c   :  { %v120_v38 = vsub.f32 0.0, %v118_v32  ;;  %v300_v43 = vrot.slane %v156_v40, 9  ;;  %v176_v46 = vmul.f32 %v175_v44, %v468_v0  ;;  %v178_v47 = vstv %s304_s22  ;;  %s314_s1 = sld [smem:[#allocation3 + $0x381]] }
  0x3d   :  { %325 = vpow2.f32 %v98_v31  ;;  %v141_v42 = vadd.f32 %v140_v35, %v138_v39  ;;  %v179_v50 = vmul.f32 %v178_v47, %v468_v0  ;;  %v186_v55 = vstv %s487_s23  ;;  %s316_s27 = sld [smem:[#allocation6 + $0x7]] }
  0x3e   :  { %v121_v41 = vmul.f32 1.442695, %v120_v38  ;;  %v161_v49 = vadd.f32 %v300_v43, %v153_v36  ;;  %v198_v54 = vstv %s308_s24  ;;  %s73_s28 = sld [smem:[#allocation8]] }
  0x3f   :  { %v143_v48 = vsub.f32 0.0, %v141_v42  ;;  %v305_v53 = vrot.slane %v179_v50, 9  ;;  %v199_v56 = vmul.f32 %v198_v54, %v468_v0  ;;  %v201_v57 = vstv %s309_s25  ;;  %s287_s29 = sld [smem:[#allocation8 + $0x1]] }
  0x40   :  { %327 = vpow2.f32 %v121_v41  ;;  %v164_v52 = vadd.f32 %v163_v45, %v161_v49  ;;  %v202_v60 = vmul.f32 %v201_v57, %v468_v0  ;;  %v209_v3 = vstv %s492_s26  ;;  %s292_s30 = sld [smem:[#allocation8 + $0x2]] }
  0x41   :  { %v144_v51 = vmul.f32 1.442695, %v143_v48  ;;  %v184_v59 = vadd.f32 %v305_v53, %v176_v46  ;;  %v221_v4 = vstv %s313_s2  ;;  %s297_s6 = sld [smem:[#allocation8 + $0x3]] }
  0x42   :  { %v166_v58 = vsub.f32 0.0, %v164_v52  ;;  %v310_v2 = vrot.slane %v202_v60, 9  ;;  %v224_v5 = vstv %s314_s1  ;;  %v222_v9 = vmul.f32 %v221_v4, %v468_v0  ;;  %s302_s7 = sld [smem:[#allocation8 + $0x4]] }
  0x43   :  { %329 = vpow2.f32 %v144_v51  ;;  %v187_v1 = vadd.f32 %v186_v55, %v184_v59  ;;  %v225_v10 = vmul.f32 %v224_v5, %v468_v0  ;;  %v232_v16 = vstv %s316_s27  ;;  %s307_s8 = sld [smem:[#allocation8 + $0x5]] }
  0x44   :  { %v167_v63 = vmul.f32 1.442695, %v166_v58  ;;  %v207_v7 = vadd.f32 %v310_v2, %v199_v56  ;;  %v79_v27 = vstv %s73_s28  ;;  %s312_s9 = sld [smem:[#allocation8 + $0x6]] }
  0x45   :  { %v189_v6 = vsub.f32 0.0, %v187_v1  ;;  %v315_v14 = vrot.slane %v225_v10, 9  ;;  %v102_v28 = vstv %s287_s29  ;;  %s317_s3 = sld [smem:[#allocation8 + $0x7]] }
  0x46   :  { %v210_v13 = vadd.f32 %v209_v3, %v207_v7  ;;  %v125_v34 = vstv %s292_s30  ;;  %v424_v7 = vmov 1966171168  }
  0x47   :  { %v324_v61 = vpop.eup %323  ;;  %v190_v12 = vmul.f32 1.442695, %v189_v6  ;;  %v230_v18 = vadd.f32 %v315_v14, %v222_v9  ;;  %v148_v40 = vstv %s297_s6  ;;  %v255_v9 = vlaneseq }
  0x48   :  { %v77_v62 = vadd.f32 1.0, %v324_v61  ;;  %v212_v15 = vsub.f32 0.0, %v210_v13  ;;  %v171_v47 = vstv %s302_s7 }
  0x49   :  { %v233_v21 = vadd.f32 %v232_v16, %v230_v18  ;;  %v194_v51 = vstv %s307_s8  ;;  %vm262_vm0 = vcmp.lt.s32.totalorder %v255_v9, 256 }
  0x4a   :  { %331 = vrcp.f32 %v77_v62  ;;  %v326_v8 = vpop.eup %325  ;;  %v213_v20 = vmul.f32 1.442695, %v212_v15  ;;  %v217_v55 = vstv %s312_s9 }
  0x4b   :  { %333 = vpow2.f32 %v167_v63  ;;  %v100_v11 = vadd.f32 1.0, %v326_v8  ;;  %v235_v23 = vsub.f32 0.0, %v233_v21  ;;  %v240_v59 = vstv %s317_s3 }
  0x4c   :  { %v244_v63 = vstv %s511_s4  ;;  %v253_v8 = vunpack.c.l.s4 %v424_v7  ;;  %s395_s4 = scalar_lea.vmem %s272_s13, 32 }
  0x4d   :  { %335 = vrcp.f32 %v100_v11  ;;  %v328_v17 = vpop.eup %327  ;;  %v236_v24 = vmul.f32 1.442695, %v235_v23  ;;  %v256_v11 = vshrl.u32 %v255_v9, 7  ;;  %p396_p1 = scmp.ne.s32.totalorder %s272_s13, %s395_s4  ;;  %p401_p3 = scmp.lt.s32.totalorder %s395_s4, %s395_s4 }
  0x4e   :  { %337 = vpow2.f32 %v190_v12  ;;  %v123_v19 = vadd.f32 1.0, %v328_v17  ;;  %v254_v10 = vunpack.c.0.s8 %v253_v8 }
  0x4f   :  { %p402_p4 = por %p401_p3, %p400_p2 }
  0x50   :  { %339 = vrcp.f32 %v123_v19  ;;  %v330_v22 = vpop.eup %329  ;;  %v257_v12 = vsub.s32 %v254_v10, %v256_v11 }
  0x51   :  { %341 = vpow2.f32 %v213_v20  ;;  %v146_v0 = vadd.f32 1.0, %v330_v22  ;;  %p403_p5 = pnand %p402_p4, %p396_p1 }
  0x53   :  { %343 = vrcp.f32 %v146_v0 }
  0x54   :  { %345 = vpow2.f32 %v236_v24 }
  0x57   :  { %v332_v25 = vpop.eup %331 }
  0x58   :  { %v334_v26 = vpop.eup %333  ;;  %v80_v31 = vmul.f32 %v332_v25, %v79_v27 }
  0x59   :  { %v169_v29 = vadd.f32 1.0, %v334_v26 }
  0x5a   :  { %v336_v30 = vpop.eup %335 }
  0x5b   :  { %347 = vrcp.f32 %v169_v29  ;;  %v338_v32 = vpop.eup %337  ;;  %v103_v33 = vmul.f32 %v336_v30, %v102_v28 }
  0x5c   :  { %v192_v35 = vadd.f32 1.0, %v338_v32 }
  0x5d   :  { %v340_v36 = vpop.eup %339  ;;  %v104_v37 = vadd.f32 %v103_v33, %v80_v31 }
  0x5e   :  { %349 = vrcp.f32 %v192_v35  ;;  %v342_v38 = vpop.eup %341  ;;  %v126_v39 = vmul.f32 %v340_v36, %v125_v34 }
  0x5f   :  { %v215_v41 = vadd.f32 1.0, %v342_v38 }
  0x60   :  { %v344_v42 = vpop.eup %343  ;;  %v127_v43 = vadd.f32 %v126_v39, %v104_v37 }
  0x61   :  { %351 = vrcp.f32 %v215_v41  ;;  %v346_v44 = vpop.eup %345  ;;  %v149_v45 = vmul.f32 %v344_v42, %v148_v40 }
  0x62   :  { %v238_v46 = vadd.f32 1.0, %v346_v44 }
  0x63   :  { %v150_v48 = vadd.f32 %v149_v45, %v127_v43 }
  0x64   :  { %353 = vrcp.f32 %v238_v46 }
  0x68   :  { %v348_v49 = vpop.eup %347 }
  0x69   :  { %v172_v50 = vmul.f32 %v348_v49, %v171_v47 }
  0x6b   :  { %v173_v52 = vadd.f32 %v172_v50, %v150_v48  ;;  %v350_v53 = vpop.eup %349 }
  0x6c   :  { %v195_v54 = vmul.f32 %v350_v53, %v194_v51 }
  0x6e   :  { %v196_v56 = vadd.f32 %v195_v54, %v173_v52  ;;  %v352_v57 = vpop.eup %351 }
  0x6f   :  { %v218_v58 = vmul.f32 %v352_v57, %v217_v55 }
  0x71   :  { %v219_v60 = vadd.f32 %v218_v58, %v196_v56  ;;  %v354_v61 = vpop.eup %353 }
  0x72   :  { %v241_v62 = vmul.f32 %v354_v61, %v240_v59 }
  0x74   :  { %v242_v1 = vadd.f32 %v241_v62, %v219_v60 }
  0x76   :  { %v245_v2 = vadd.f32 %v244_v63, %v242_v1 }
  0x78   :  { %v246_v3 = vsub.f32 0.0, %v245_v2 }
  0x7a   :  { %v247_v4 = vmul.f32 1.442695, %v246_v3 }
  0x7c   :  { %355 = vpow2.f32 %v247_v4 }
  0x89   :  { %v356_v5 = vpop.eup %355 }
  0x8a   :  { %v249_v6 = vadd.f32 1.0, %v356_v5 }
  0x8c   :  { %357 = vrcp.f32 %v249_v6 }
  0x99   :  { %v358_v13 = vpop.eup %357 }
  0x9a   :  { %v258_v14 = vrot.slane %v358_v13, %v257_v12 }
  0x9c   :  { %264 = vst.msk [vmem:[#allocation9] sm:$0x3] %vm262_vm0, %v258_v14 }
  0x9d   :  { %406 = shalt.err (!%p403_p5)
}
  0x9e   :  { %274 = dma.vmem_to_hbm [thread:$0]  %s272_s13, 32, %s512_s5, [#allocation4]  }
  0x9f   :  { %419 = dma.done.wait [#allocation4], 32  }
  0xa0   :  { %420 = vsyncadd [#allocation4], 4294967264 }
  0xa1   :  { %278 = vsyncpa [#allocation4], 1 }
  0xa2   :  { %279 = vsyncpa [#allocation5], 1 }
  0xa3   :  { %280 = vsyncpa [#allocation7], 1 }

</bundles_post_ra>
